<compile_context>
chip_gen: v7x
topology: tpu7x:2x2x1
jax: 0.10.0
libtpu: 0.0.40
codegen_flags: <defaults>
</compile_context>

<pallas_src>
import functools

import jax
import jax.numpy as jnp
from jax import lax
from jax.experimental import pallas as pl
from jax.experimental.pallas import tpu as pltpu


def _biattention_kernel(x_ref, m_ref, bias_ref, w_in_ref, scale_ref,
                        out_ref, rowmax_ref):
    # x_ref:      (1, TLi, D)  input tile (input dtype)
    # m_ref:      (1, Lm,  D)  full memory for this batch, bf16
    # bias_ref:   (1, 1,  Lm)  f32: memory_dot + (-1e30)*(1-mask)
    # w_in_ref, scale_ref: (1, D) f32
    # out_ref:    (1, TLi, 4*D)  chunks 0..2 written here (chunk 3 by fix-up)
    # rowmax_ref: (1, TLi, 1) f32 per-row max of att (softmax over Li outside)
    x = x_ref[0]                                    # (TLi, D)
    m_bf = m_ref[0]                                 # (Lm, D), bf16
    bias = bias_ref[0]                              # (1, Lm), f32

    xf = x.astype(jnp.float32)
    w_in = w_in_ref[...]                            # (1, D) f32
    scale = scale_ref[...]                          # (1, D) f32

    # input_dot: degenerate N=1 projection -> VPU mul + cross-lane sum.
    input_dot = jnp.sum(xf * w_in, axis=-1, keepdims=True)      # (TLi, 1)

    # cross_dot on the MXU: bf16 operands, f32 accumulation, contracting the
    # last dim of both operands (no memory transpose).
    xs_bf = (xf * scale).astype(jnp.bfloat16)                   # (TLi, D)
    cross_dot = lax.dot_general(
        xs_bf, m_bf, dimension_numbers=(((1,), (1,)), ((), ())),
        preferred_element_type=jnp.float32)                     # (TLi, Lm)

    # Logits + precomputed memory projection & mask penalty, all in f32.
    att = cross_dot + input_dot + bias

    # Softmax over memory: f32 statistics, deferred normalization.
    row_max = jnp.max(att, axis=-1, keepdims=True)              # (TLi, 1)
    p = jnp.exp(att - row_max)                                  # (TLi, Lm) f32
    inv_denom = pl.reciprocal(jnp.sum(p, axis=-1, keepdims=True), approx=True)

    # output_one = softmax(att) @ memory  computed as  (p @ m) * inv_denom.
    o1 = lax.dot_general(
        p.astype(jnp.bfloat16), m_bf,
        dimension_numbers=(((1,), (0,)), ((), ())),
        preferred_element_type=jnp.float32)                     # (TLi, D)
    o1 = o1 * inv_denom

    # Direct slice stores (no concatenate). Chunk 3 ([3D:4D]) is written by
    # the aliased fix-up kernel once output_two (global over Li) is known.
    odt = out_ref.dtype
    d = x.shape[-1]
    out_ref[0, :, 0:d] = x.astype(odt)
    out_ref[0, :, d:2 * d] = o1.astype(odt)
    out_ref[0, :, 2 * d:3 * d] = (xf * o1).astype(odt)
    rowmax_ref[0] = row_max


def _fixup_kernel(o1_ref, ot_ref, out_ref):
    # In-place (aliased) fix-up:  out[..., 3D:4D] = output_one * output_two.
    # o1_ref:  (1, TLi, D)  aliased view of out[..., D:2D]  (output_one)
    # ot_ref:  (1, 1,  D)   f32 per-batch output_two
    # out_ref: (1, TLi, D)  aliased view of out[..., 3D:4D]
    o1 = o1_ref[0].astype(jnp.float32)              # (TLi, D)
    ot = ot_ref[0]                                  # (1, D), broadcasts
    out_ref[0] = (o1 * ot).astype(out_ref.dtype)


def _choose_li_tile(li, target=512):
    """Largest multiple-of-8 divisor of li that is <= target (or li itself)."""
    if li <= target:
        return li
    for t in range(target, 7, -8):
        if li % t == 0:
            return t
    return li


def biattention(inp, mem, mask, w_in, w_mem, dot_scale, *, tile_li=None):
    """BiAttention forward (eval mode).

    inp: (B, Li, D), mem: (B, Lm, D), mask: (B, Lm) float {0,1}.
    w_in, w_mem: (1, D) linear weights (no bias). dot_scale: (D,).
    Returns (B, Li, 4*D) in inp.dtype.
    """
    B, Li, D = inp.shape
    Lm = mem.shape[1]
    if tile_li is None:
        tile_li = _choose_li_tile(Li)
    assert Li % tile_li == 0, (Li, tile_li)
    n_li = Li // tile_li
    out_dtype = inp.dtype

    # Hoisted per-batch work (tiny, runs once in XLA, f32):
    #   bias = memory_linear(mem) - 1e30 * (1 - mask)
    maskf = mask.astype(jnp.float32)                                # (B, Lm)
    memory_dot = jnp.einsum('bld,od->bl', mem.astype(jnp.float32),
                            w_mem.astype(jnp.float32))              # (B, Lm)
    bias = (memory_dot - 1e30 * (1.0 - maskf)).reshape(B, 1, Lm)

    mem_bf = mem.astype(jnp.bfloat16)    # cast once; kernel only feeds the MXU
    w_in2 = w_in.astype(jnp.float32).reshape(1, D)
    scale2 = dot_scale.astype(jnp.float32).reshape(1, D)

    out, rowmax = pl.pallas_call(
        _biattention_kernel,
        out_shape=(
            jax.ShapeDtypeStruct((B, Li, 4 * D), out_dtype),
            jax.ShapeDtypeStruct((B, Li, 1), jnp.float32),
        ),
        grid_spec=pltpu.PrefetchScalarGridSpec(
            num_scalar_prefetch=0,
            grid=(B, n_li),
            in_specs=[
                pl.BlockSpec((1, tile_li, D), lambda b, i: (b, i, 0)),
                pl.BlockSpec((1, Lm, D), lambda b, i: (b, 0, 0)),
                pl.BlockSpec((1, 1, Lm), lambda b, i: (b, 0, 0)),
                pl.BlockSpec((1, D), lambda b, i: (0, 0)),
                pl.BlockSpec((1, D), lambda b, i: (0, 0)),
            ],
            out_specs=(
                pl.BlockSpec((1, tile_li, 4 * D), lambda b, i: (b, i, 0)),
                pl.BlockSpec((1, tile_li, 1), lambda b, i: (b, i, 0)),
            ),
        ),
        compiler_params=pltpu.CompilerParams(
            dimension_semantics=("parallel", "parallel"),
            vmem_limit_bytes=64 * 1024 * 1024,
        ),
    )(inp, mem_bf, bias, w_in2, scale2)

    # weight_two = softmax over Li of per-row max; output_two = weight_two@inp.
    # Couples every Li tile -> tiny XLA epilogue ((B,Li) softmax + (B,D) dot),
    # kept in f32 until the final cast.
    weight_two = jax.nn.softmax(rowmax[:, :, 0], axis=-1)           # (B, Li)
    output_two = jnp.einsum('bi,bid->bd', weight_two,
                            inp.astype(jnp.float32))                # (B, D)

    if D % 128 == 0 and (tile_li % 8 == 0 or tile_li == Li):
        # Aliased in-place fix-up: reads only the [D:2D] chunk, writes only the
        # [3D:4D] chunk, instead of re-reading/rewriting the whole (B, Li, 4D).
        out = pl.pallas_call(
            _fixup_kernel,
            out_shape=jax.ShapeDtypeStruct((B, Li, 4 * D), out_dtype),
            grid_spec=pltpu.PrefetchScalarGridSpec(
                num_scalar_prefetch=0,
                grid=(B, n_li),
                in_specs=[
                    pl.BlockSpec((1, tile_li, D), lambda b, i: (b, i, 1)),
                    pl.BlockSpec((1, 1, D), lambda b, i: (b, 0, 0)),
                ],
                out_specs=pl.BlockSpec((1, tile_li, D), lambda b, i: (b, i, 3)),
            ),
            input_output_aliases={0: 0},
            compiler_params=pltpu.CompilerParams(
                dimension_semantics=("parallel", "parallel")),
        )(out, output_two.reshape(B, 1, D))
    else:
        # Lane-misaligned chunks (D % 128 != 0): XLA fallback.
        o1 = out[:, :, D:2 * D].astype(jnp.float32)
        out = out.at[:, :, 3 * D:].set(
            (o1 * output_two[:, None, :]).astype(out_dtype))
    return out


def biattention_ref(inp, mem, mask, w_in, w_mem, dot_scale):
    """Pure-JAX f32 reference mirroring the PyTorch forward (eval mode)."""
    B, Li, D = inp.shape
    Lm = mem.shape[1]
    input_dot = inp @ w_in.T                                # (B, Li, 1)
    memory_dot = (mem @ w_mem.T).reshape(B, 1, Lm)          # (B, 1, Lm)
    cross_dot = jnp.einsum('bid,bjd->bij', inp * dot_scale, mem)
    att = input_dot + memory_dot + cross_dot
    att = att - 1e30 * (1.0 - mask[:, None, :])
    weight_one = jax.nn.softmax(att, axis=-1)
    output_one = jnp.einsum('bij,bjd->bid', weight_one, mem)
    weight_two = jax.nn.softmax(jnp.max(att, axis=-1), axis=-1).reshape(B, 1, Li)
    output_two = jnp.einsum('bij,bjd->bid', weight_two, inp)
    return jnp.concatenate(
        [inp, output_one, inp * output_one, output_two * output_one], axis=-1)


if __name__ == "__main__":
    key = jax.random.PRNGKey(0)
    # D chosen as a multiple of 128 so every output chunk store is lane-dense
    # and the aliased Pallas fix-up path is exercised.
    B, Li, Lm, D = 2, 16, 8, 128

    k1, k2, k3, k4, k5 = jax.random.split(key, 5)
    inp = jax.random.normal(k1, (B, Li, D), dtype=jnp.float32)
    mem = jax.random.normal(k2, (B, Lm, D), dtype=jnp.float32)

    # Deterministic mask: batch 0 keeps all memory positions, batch 1 keeps
    # the first half.
    pos = jnp.arange(Lm)
    mask = jnp.stack([jnp.ones((Lm,)),
                      (pos < Lm // 2).astype(jnp.float32)], axis=0)

    # Parameters (deterministic init mimicking nn.Linear / uniform dot_scale).
    w_in = jax.random.uniform(k3, (1, D), minval=-1.0 / D ** 0.5,
                              maxval=1.0 / D ** 0.5, dtype=jnp.float32)
    w_mem = jax.random.uniform(k4, (1, D), minval=-1.0 / D ** 0.5,
                               maxval=1.0 / D ** 0.5, dtype=jnp.float32)
    dot_scale = jax.random.uniform(k5, (D,), minval=0.0,
                                   maxval=1.0 / D ** 0.5, dtype=jnp.float32)

    # tile_li=8 -> 2 Li tiles per batch: exercises the tiled grid + fix-up path.
    fn = jax.jit(functools.partial(biattention, tile_li=8))
    out = jax.block_until_ready(fn(inp, mem, mask, w_in, w_mem, dot_scale))

    ref = biattention_ref(inp, mem, mask, w_in, w_mem, dot_scale)
    assert out.shape == (B, Li, 4 * D)
    # bf16 MXU operands + approx reciprocal => looser tolerance than pure f32.
    max_err = float(jnp.max(jnp.abs(out - ref)))
    assert jnp.allclose(out, ref, rtol=5e-2, atol=5e-2), (
        f"mismatch vs reference; max abs err = {max_err}")

    print("KERNEL_OK")
</pallas_src>

<mosaic_0001>
module attributes {stable_mosaic.version = 11 : i64} {
  func.func @_biattention_kernel(%arg0: i32, %arg1: i32, %arg2: memref<1x8x128xf32, #tpu.memory_space<vmem>>, %arg3: memref<1x8x128xbf16, #tpu.memory_space<vmem>>, %arg4: memref<1x1x8xf32, #tpu.memory_space<vmem>>, %arg5: memref<1x128xf32, #tpu.memory_space<vmem>>, %arg6: memref<1x128xf32, #tpu.memory_space<vmem>>, %arg7: memref<1x8x512xf32, #tpu.memory_space<vmem>>, %arg8: memref<1x8x1xf32, #tpu.memory_space<vmem>>) attributes {dimension_semantics = [#tpu.dimension_semantics<parallel>, #tpu.dimension_semantics<parallel>], iteration_bounds = array<i64: 2, 2>, scalar_prefetch = 0 : i64, scratch_operands = 0 : i64, tpu.core_type = #tpu.core_type<tc>, window_params = [{transform_indices = @transform_0, window_bounds = array<i64: 1, 8, 128>}, {transform_indices = @transform_1, window_bounds = array<i64: 1, 8, 128>}, {transform_indices = @transform_2, window_bounds = array<i64: 1, 1, 8>}, {pipeline_mode = #tpu.pipeline_mode<synchronous>, transform_indices = @transform_3, window_bounds = array<i64: 1, 128>}, {pipeline_mode = #tpu.pipeline_mode<synchronous>, transform_indices = @transform_4, window_bounds = array<i64: 1, 128>}, {transform_indices = @transform_5, window_bounds = array<i64: 1, 8, 512>}, {transform_indices = @transform_6, window_bounds = array<i64: 1, 8, 1>}]} {
    %c0 = arith.constant 0 : index
    %c0_0 = arith.constant 0 : index
    %c0_1 = arith.constant 0 : index
    %0 = vector.load %arg2[%c0, %c0_0, %c0_1] : memref<1x8x128xf32, #tpu.memory_space<vmem>>, vector<1x8x128xf32>
    %1 = vector.shape_cast %0 : vector<1x8x128xf32> to vector<8x128xf32>
    %c0_2 = arith.constant 0 : index
    %c0_3 = arith.constant 0 : index
    %c0_4 = arith.constant 0 : index
    %2 = vector.load %arg3[%c0_2, %c0_3, %c0_4] : memref<1x8x128xbf16, #tpu.memory_space<vmem>>, vector<1x8x128xbf16>
    %3 = vector.shape_cast %2 : vector<1x8x128xbf16> to vector<8x128xbf16>
    %c0_5 = arith.constant 0 : index
    %c0_6 = arith.constant 0 : index
    %c0_7 = arith.constant 0 : index
    %4 = vector.load %arg4[%c0_5, %c0_6, %c0_7] : memref<1x1x8xf32, #tpu.memory_space<vmem>>, vector<1x1x8xf32>
    %5 = vector.shape_cast %4 : vector<1x1x8xf32> to vector<1x8xf32>
    %c0_8 = arith.constant 0 : index
    %c0_9 = arith.constant 0 : index
    %6 = vector.load %arg5[%c0_8, %c0_9] : memref<1x128xf32, #tpu.memory_space<vmem>>, vector<1x128xf32>
    %c0_10 = arith.constant 0 : index
    %c0_11 = arith.constant 0 : index
    %7 = vector.load %arg6[%c0_10, %c0_11] : memref<1x128xf32, #tpu.memory_space<vmem>>, vector<1x128xf32>
    %8 = vector.broadcast %6 : vector<1x128xf32> to vector<8x128xf32>
    %9 = arith.mulf %1, %8 : vector<8x128xf32>
    %cst = arith.constant dense<0.000000e+00> : vector<8xf32>
    %10 = vector.multi_reduction <add>, %9, %cst [1] : vector<8x128xf32> to vector<8xf32>
    %11 = vector.shape_cast %10 : vector<8xf32> to vector<8x1xf32>
    %12 = vector.broadcast %7 : vector<1x128xf32> to vector<8x128xf32>
    %13 = arith.mulf %1, %12 : vector<8x128xf32>
    %14 = arith.truncf %13 : vector<8x128xf32> to vector<8x128xbf16>
    %cst_12 = arith.constant dense<0.000000e+00> : vector<8x8xf32>
    %15 = tpu.matmul %14, %3, %cst_12 {dimension_numbers = #tpu.dot_dimension_numbers<[1], [1], [0], [0], [0, 0, 1, 0], [], []>} : vector<8x128xbf16>, vector<8x128xbf16>, vector<8x8xf32> -> vector<8x8xf32>
    %16 = vector.broadcast %11 : vector<8x1xf32> to vector<8x8xf32>
    %17 = arith.addf %15, %16 : vector<8x8xf32>
    %18 = vector.broadcast %5 : vector<1x8xf32> to vector<8x8xf32>
    %19 = arith.addf %17, %18 : vector<8x8xf32>
    %cst_13 = arith.constant dense<0xFF800000> : vector<8xf32>
    %20 = vector.multi_reduction <maximumf>, %19, %cst_13 [1] : vector<8x8xf32> to vector<8xf32>
    %21 = vector.shape_cast %20 : vector<8xf32> to vector<8x1xf32>
    %22 = vector.broadcast %21 : vector<8x1xf32> to vector<8x8xf32>
    %23 = arith.subf %19, %22 : vector<8x8xf32>
    %24 = math.exp %23 : vector<8x8xf32>
    %cst_14 = arith.constant dense<0.000000e+00> : vector<8xf32>
    %25 = vector.multi_reduction <add>, %24, %cst_14 [1] : vector<8x8xf32> to vector<8xf32>
    %26 = vector.shape_cast %25 : vector<8xf32> to vector<8x1xf32>
    %27 = tpu.reciprocal %26 {approx = true} : vector<8x1xf32> -> vector<8x1xf32>
    %28 = arith.truncf %24 : vector<8x8xf32> to vector<8x8xbf16>
    %cst_15 = arith.constant dense<0.000000e+00> : vector<8x128xf32>
    %29 = tpu.matmul %28, %3, %cst_15 {dimension_numbers = #tpu.dot_dimension_numbers<[1], [0], [0], [1], [0, 0, 1, 1], [], []>} : vector<8x8xbf16>, vector<8x128xbf16>, vector<8x128xf32> -> vector<8x128xf32>
    %30 = vector.broadcast %27 : vector<8x1xf32> to vector<8x128xf32>
    %31 = arith.mulf %29, %30 : vector<8x128xf32>
    %c0_16 = arith.constant 0 : index
    %c0_17 = arith.constant 0 : index
    %c0_18 = arith.constant 0 : index
    %32 = vector.load %arg7[%c0_16, %c0_17, %c0_18] : memref<1x8x512xf32, #tpu.memory_space<vmem>>, vector<1x8x128xf32>
    %33 = vector.shape_cast %32 : vector<1x8x128xf32> to vector<8x128xf32>
    %34 = vector.shape_cast %1 : vector<8x128xf32> to vector<1x8x128xf32>
    tpu.vector_store %arg7[%c0_16, %c0_17, %c0_18], %34 {strides = array<i32>} : memref<1x8x512xf32, #tpu.memory_space<vmem>>, vector<1x8x128xf32>,
    %c0_19 = arith.constant 0 : index
    %c0_20 = arith.constant 0 : index
    %c128 = arith.constant 128 : index
    %35 = vector.load %arg7[%c0_19, %c0_20, %c128] : memref<1x8x512xf32, #tpu.memory_space<vmem>>, vector<1x8x128xf32>
    %36 = vector.shape_cast %35 : vector<1x8x128xf32> to vector<8x128xf32>
    %37 = vector.shape_cast %31 : vector<8x128xf32> to vector<1x8x128xf32>
    tpu.vector_store %arg7[%c0_19, %c0_20, %c128], %37 {strides = array<i32>} : memref<1x8x512xf32, #tpu.memory_space<vmem>>, vector<1x8x128xf32>,
    %38 = arith.mulf %1, %31 : vector<8x128xf32>
    %c0_21 = arith.constant 0 : index
    %c0_22 = arith.constant 0 : index
    %c256 = arith.constant 256 : index
    %39 = vector.load %arg7[%c0_21, %c0_22, %c256] : memref<1x8x512xf32, #tpu.memory_space<vmem>>, vector<1x8x128xf32>
    %40 = vector.shape_cast %39 : vector<1x8x128xf32> to vector<8x128xf32>
    %41 = vector.shape_cast %38 : vector<8x128xf32> to vector<1x8x128xf32>
    tpu.vector_store %arg7[%c0_21, %c0_22, %c256], %41 {strides = array<i32>} : memref<1x8x512xf32, #tpu.memory_space<vmem>>, vector<1x8x128xf32>,
    %c0_23 = arith.constant 0 : index
    %c0_24 = arith.constant 0 : index
    %c0_25 = arith.constant 0 : index
    %42 = vector.load %arg8[%c0_23, %c0_24, %c0_25] : memref<1x8x1xf32, #tpu.memory_space<vmem>>, vector<1x8x1xf32>
    %43 = vector.shape_cast %42 : vector<1x8x1xf32> to vector<8x1xf32>
    %44 = vector.shape_cast %21 : vector<8x1xf32> to vector<1x8x1xf32>
    tpu.vector_store %arg8[%c0_23, %c0_24, %c0_25], %44 {strides = array<i32>} : memref<1x8x1xf32, #tpu.memory_space<vmem>>, vector<1x8x1xf32>,
    return
  }
  func.func @transform_0(%arg0: i32, %arg1: i32) -> (i32, i32, i32) {
    %c0_i32 = arith.constant 0 : i32
    %c0_i32_0 = arith.constant 0 : i32
    return %arg0, %arg1, %c0_i32 : i32, i32, i32
  }
  func.func @transform_1(%arg0: i32, %arg1: i32) -> (i32, i32, i32) {
    %c0_i32 = arith.constant 0 : i32
    %c0_i32_0 = arith.constant 0 : i32
    %c0_i32_1 = arith.constant 0 : i32
    return %arg0, %c0_i32, %c0_i32_0 : i32, i32, i32
  }
  func.func @transform_2(%arg0: i32, %arg1: i32) -> (i32, i32, i32) {
    %c0_i32 = arith.constant 0 : i32
    %c0_i32_0 = arith.constant 0 : i32
    %c0_i32_1 = arith.constant 0 : i32
    return %arg0, %c0_i32, %c0_i32_0 : i32, i32, i32
  }
  func.func @transform_3(%arg0: i32, %arg1: i32) -> (i32, i32) {
    %c0_i32 = arith.constant 0 : i32
    %c0_i32_0 = arith.constant 0 : i32
    %c0_i32_1 = arith.constant 0 : i32
    return %c0_i32, %c0_i32_0 : i32, i32
  }
  func.func @transform_4(%arg0: i32, %arg1: i32) -> (i32, i32) {
    %c0_i32 = arith.constant 0 : i32
    %c0_i32_0 = arith.constant 0 : i32
    %c0_i32_1 = arith.constant 0 : i32
    return %c0_i32, %c0_i32_0 : i32, i32
  }
  func.func @transform_5(%arg0: i32, %arg1: i32) -> (i32, i32, i32) {
    %c0_i32 = arith.constant 0 : i32
    %c0_i32_0 = arith.constant 0 : i32
    return %arg0, %arg1, %c0_i32 : i32, i32, i32
  }
  func.func @transform_6(%arg0: i32, %arg1: i32) -> (i32, i32, i32) {
    %c0_i32 = arith.constant 0 : i32
    %c0_i32_0 = arith.constant 0 : i32
    return %arg0, %arg1, %c0_i32 : i32, i32, i32
  }
}

module attributes {stable_mosaic.version = 11 : i64} {
  func.func @_fixup_kernel(%arg0: i32, %arg1: i32, %arg2: memref<1x8x128xf32, #tpu.memory_space<vmem>>, %arg3: memref<1x1x128xf32, #tpu.memory_space<vmem>>, %arg4: memref<1x8x128xf32, #tpu.memory_space<vmem>>) attributes {dimension_semantics = [#tpu.dimension_semantics<parallel>, #tpu.dimension_semantics<parallel>], iteration_bounds = array<i64: 2, 2>, scalar_prefetch = 0 : i64, scratch_operands = 0 : i64, tpu.core_type = #tpu.core_type<tc>, window_params = [{transform_indices = @transform_0, window_bounds = array<i64: 1, 8, 128>}, {transform_indices = @transform_1, window_bounds = array<i64: 1, 1, 128>}, {transform_indices = @transform_2, window_bounds = array<i64: 1, 8, 128>}]} {
    %c0 = arith.constant 0 : index
    %c0_0 = arith.constant 0 : index
    %c0_1 = arith.constant 0 : index
    %0 = vector.load %arg2[%c0, %c0_0, %c0_1] : memref<1x8x128xf32, #tpu.memory_space<vmem>>, vector<1x8x128xf32>
    %1 = vector.shape_cast %0 : vector<1x8x128xf32> to vector<8x128xf32>
    %c0_2 = arith.constant 0 : index
    %c0_3 = arith.constant 0 : index
    %c0_4 = arith.constant 0 : index
    %2 = vector.load %arg3[%c0_2, %c0_3, %c0_4] : memref<1x1x128xf32, #tpu.memory_space<vmem>>, vector<1x1x128xf32>
    %3 = vector.shape_cast %2 : vector<1x1x128xf32> to vector<1x128xf32>
    %4 = vector.broadcast %3 : vector<1x128xf32> to vector<8x128xf32>
    %5 = arith.mulf %1, %4 : vector<8x128xf32>
    %c0_5 = arith.constant 0 : index
    %c0_6 = arith.constant 0 : index
    %c0_7 = arith.constant 0 : index
    %6 = vector.load %arg4[%c0_5, %c0_6, %c0_7] : memref<1x8x128xf32, #tpu.memory_space<vmem>>, vector<1x8x128xf32>
    %7 = vector.shape_cast %6 : vector<1x8x128xf32> to vector<8x128xf32>
    %8 = vector.shape_cast %5 : vector<8x128xf32> to vector<1x8x128xf32>
    tpu.vector_store %arg4[%c0_5, %c0_6, %c0_7], %8 {strides = array<i32>} : memref<1x8x128xf32, #tpu.memory_space<vmem>>, vector<1x8x128xf32>,
    return
  }
  func.func @transform_0(%arg0: i32, %arg1: i32) -> (i32, i32, i32) {
    %c1_i32 = arith.constant 1 : i32
    %c0_i32 = arith.constant 0 : i32
    return %arg0, %arg1, %c1_i32 : i32, i32, i32
  }
  func.func @transform_1(%arg0: i32, %arg1: i32) -> (i32, i32, i32) {
    %c0_i32 = arith.constant 0 : i32
    %c0_i32_0 = arith.constant 0 : i32
    %c0_i32_1 = arith.constant 0 : i32
    return %arg0, %c0_i32, %c0_i32_0 : i32, i32, i32
  }
  func.func @transform_2(%arg0: i32, %arg1: i32) -> (i32, i32, i32) {
    %c3_i32 = arith.constant 3 : i32
    %c0_i32 = arith.constant 0 : i32
    return %arg0, %arg1, %c3_i32 : i32, i32, i32
  }
}

</mosaic_0001>

<bundles_post_ra>
// kernel: biattention.3
= control target key start
LH: loop header
LB: loop body
LE: loop exit
PB: predicated region body
PF: predicated region fallthrough
CT: control target
= control target key end

     0   :  { %s759_s0 = inlined_call_operand.hbm [shape: f32[2,16,512], index: 0, kind: input, shape index: {}, may-alias: {0,2}]   ;;  %s760_s1 = inlined_call_operand.vmem [shape: f32[2,1,128], index: 1, kind: input, shape index: {}]   ;;  %s761_s2 = inlined_call_operand.hbm [shape: f32[2,16,512], index: 2, kind: output, shape index: {}, may-alias: {0,2}]  }
   0x1   :  { %763 = sst [smem:[#allocation8_spill]] %s759_s0 }
   0x2   :  { %7 = vsyncpa [#allocation3], 0 }
   0x3   :  { %9 = vsyncpa [#allocation3 + $0x1], 0 }
   0x4   :  { %10 = vsyncpa [#allocation4], 0 }
   0x5   :  { %12 = vsyncpa [#allocation4 + $0x1], 0  ;;  %s564_s9 = smov 0   ;;  %s566_s10 = smov 0  }
   0x6   :  { %s568_s11 = smov 0   ;;  %s570_s12 = smov 0  }
   0x7   :  { %s572_s13 = smov 0   ;;  %s574_s14 = smov 0  }
   0x8   :  { %s576_s15 = smov 0   ;;  %s578_s16 = smov 0  }
   0x9 LB: > { %s319_s17 = sadd.s32 4294967295, %s545_s16   ;;  %s320_s18 = sadd.s32 4294967294, %s545_s16   ;;  %s545_s16 = sphi %s578_s16, %s18_s16   ;;  %s541_s15 = sphi %s576_s15, %s779_s15   ;;  %s537_s14 = sphi %s574_s14, %s778_s14   ;;  %s533_s13 = sphi %s572_s13, %s777_s13   ;;  %s529_s12 = sphi %s570_s12, %s776_s12   ;;  %s525_s11 = sphi %s568_s11, %s775_s11   ;;  %s521_s10 = sphi %s566_s10, %s774_s10   ;;  %s517_s9 = sphi %s564_s9, %s773_s9  }
   0xa   : > { %s27_s19 = sadd.s32 1, %s537_s14  ;;  %s30_s20 = sadd.s32 1, %s541_s15 }
   0xb   : > { %p28_p0 = scmp.ge.s32.totalorder %s27_s19, 2  ;;  %s39_s21 = sadd.s32 1, %s525_s11 }
   0xc   : > { %p46_p1 = scmp.ne.s32.totalorder %s525_s11, %s521_s10  ;;  %p47_p2 = scmp.eq.s32.totalorder %s545_s16, 0 }
   0xd   : > { %s781_s19 = smov (%p28_p0, %s27_s19), 0  ;;  %s783_s20 = smov (!%p28_p0, %s30_s20), %s541_s15 }
   0xe   : > { %s35_s22 = ssub.s32 %s537_s14, %s781_s19  ;;  %p617_p3 = por %p47_p2, %p46_p1 }
   0xf   : > { %p32_p4 = scmp.ge.s32.totalorder %s783_s20, 2  ;;  %p52_p5 = scmp.ne.s32.totalorder %s521_s10, %s517_s9 }
  0x10   : > { %p53_p6 = scmp.eq.s32.totalorder %s319_s17, 0  ;;  %p104_p7 = scmp.eq.s32.totalorder %s319_s17, 3 }
  0x11   : > { %s785_s20 = smov (%p32_p4, %s783_s20), 0  ;;  %p110_p10 = scmp.eq.s32.totalorder %s320_s18, 3 }
  0x12   : > { %p625_p8 = por %p53_p6, %p52_p5  ;;  %p629_p9 = por %p104_p7, %p46_p1 }
  0x13   : > { %s34_s26 = ssub.s32 %s541_s15, %s785_s20  ;;  %p635_p12 = por %p110_p10, %p52_p5 }
  0x14   : > { %s766_s25 = scalar_select %p629_p9, 1, 0 }
  0x15   : > { %s36_s27 = sor.u32 %s35_s22, %s34_s26  ;;  %p349_p13 = scmp.lt.s32.totalorder %s545_s16, 4 }
  0x16   : > { %p37_p11 = scmp.eq.s32.totalorder %s36_s27, 0  ;;  %s130_s29 = sand.u32 1, %s525_s11  }
  0x17   : > { %s767_s28 = scalar_select %p635_p12, 1, 0 }
  0x18   : > { %s642_s30 = scalar_select %p37_p11, %s525_s11, %s39_s21  }
  0x19   : > { %s323_s3 = sshll.u32 %s130_s29, 3  ;;  %s324_s4 = sshll.u32 %s537_s14, 2 }
  0x1a   : > { %s325_s5 = sshll.u32 %s541_s15, 3  ;;  %s134_s6 = scalar_lea.vmem [#allocation2], %s323_s3 }
  0x1b   : > { %s145_s7 = sshll.u32 %s134_s6, 4  ;;  %s250_s8 = sadd.s32 %s325_s5, %s324_s4  ;;  %s646_s7 = int_to_ptr.vmem [resolvable:$true] %s145_s7 }
  0x1c   : > { %s326_s17 = sshll.u32 %s250_s8, 7  ;;  %p650_p0 = pnand %p349_p13, %p617_p3 }
  0x1d   : > { %s769_s0 = sld [smem:[#allocation8_spill]]  ;;  %s131_s3 = scalar_lea.sflag [#allocation3], %s130_s29 }
  0x1e   : > { %p417_p3 = pneg %p650_p0 }
  0x23   : > { %s252_s21 = scalar_lea.hbm %s769_s0, %s326_s17  ;;  %s420_s6 = scalar_lea.hbm %s769_s0, 2048 }
  0x24   : > { %s658_s27 = scalar_lea.hbm %s252_s21, 128  ;;  %s445_s4 = scalar_lea.hbm %s252_s21, 256 }
  0x25   : > { %p416_p2 = scmp.ne.s32.totalorder %s658_s27, %s445_s4  ;;  %p421_p6 = scmp.lt.u32.totalorder %s658_s27, %s769_s0 }
  0x26   : > { %p422_p7 = scmp.lt.u32.totalorder %s420_s6, %s445_s4  ;;  %p424_p11 = scmp.lt.u32.totalorder %s445_s4, %s658_s27 }
  0x27   : > { %p418_p4 = pnand %p417_p3, %p416_p2 }
  0x28   : > { %p423_p10 = por %p422_p7, %p421_p6 }
  0x29   : > { %p419_p5 = pneg %p418_p4 }
  0x2a   : > { %p425_p13 = por %p424_p11, %p423_p10 }
  0x2c   : > { %p426_p1 = pnand %p425_p13, %p419_p5 }
  0x2e   : > { %429 = shalt.err (!%p426_p1)
}
  0x2f   : > { %s430_s29 = scalar_lea.vmem %s646_s7, 128  ;;  %s547_s22 = smov [#allocation2]  }
  0x30   : > { %p431_p2 = scmp.ne.s32.totalorder %s646_s7, %s430_s29  ;;  %s435_s26 = sshll.u32 %s547_s22, 4  ;;  %s436_s26 = int_to_ptr.vmem [resolvable:$false] %s435_s26 }
  0x31   : > { %s437_s21 = scalar_lea.vmem %s436_s26, 256  ;;  %p438_p9 = scmp.lt.s32.totalorder %s646_s7, %s436_s26 }
  0x32   : > { %p433_p4 = pnand %p431_p2, %p417_p3  ;;  %p439_p6 = scmp.lt.s32.totalorder %s437_s21, %s430_s29 }
  0x34   : > { %p434_p12 = pneg %p433_p4  ;;  %p440_p7 = por %p439_p6, %p438_p9 }
  0x36   : > { %p441_p10 = pnand %p440_p7, %p434_p12 }
  0x38   : > { %444 = shalt.err (!%p441_p10)
}
  0x39   : > { %344 = dma.hbm_to_vmem [thread:$0]  (!%p650_p0), %s658_s27, 128, %s646_s7, %s131_s3  }
  0x3a   : > { %p156_p1 = scmp.lt.s32.totalorder %s545_s16, 5  ;;  %p770_p5 = scmp.ge.s32.totalorder %s545_s16, 1 }
  0x3c   : > { %p157_p3 = pnand %p770_p5, %p156_p1 }
  0x3d   : > { %s688_s4 = sand.u32 (!%p157_p3), 1, %s521_s10  }
  0x3e   : > { %160 = sbr.rel (%p157_p3) target bundleno = 100 (0x64), region = 28  ;;  %s328_s23 = sshll.u32 (!%p157_p3), %s688_s4, 3 }
  0x3f   : > { %s163_s5 = scalar_lea.sflag (!%p157_p3), [#allocation3], %s688_s4  ;;  %s166_s6 = scalar_lea.vmem (!%p157_p3), [#allocation2], %s328_s23 }
  0x45   : > { %508 = dma.done.wait (%p625_p8), %s163_s5, 128  }
  0x46   : > { %510 = vsyncadd (%p625_p8), %s163_s5, 4294967168  ;;  %p190_p9 = scmp.lt.s32.totalorder %s533_s13, 1  ;;  %s332_s18 = sshll.u32 %s529_s12, 2  ;;  %v193_v0 = vld [vmem:[%s166_s6] sm:$0xff] }
  0x47   : > { %s333_s17 = sshll.u32 %s533_s13, 3  ;;  %s189_s29 = scalar_lea.vmem [#allocation5], %s328_s23 }
  0x48   : > { %s191_s7 = scalar_select %p190_p9, %s533_s13, 1 }
  0x49   : > { %s221_s22 = sshll.u32 %s189_s29, 4  ;;  %s271_s26 = sadd.s32 %s333_s17, %s332_s18  ;;  %s706_s22 = int_to_ptr.vmem [resolvable:$true] %s221_s22 }
  0x4a   : > { %s192_s8 = scalar_lea.vmem %s760_s1, %s191_s7  ;;  %s334_s21 = sshll.u32 %s271_s26, 7 }
  0x4b   : > { %v330_v1 = vld [vmem:[%s192_s8] ss:$0 sm:$0xff]  ;;  %s273_s0 = scalar_lea.hbm %s761_s2, %s334_s21  ;;  %s204_s13 = scalar_lea.sflag [#allocation4], %s688_s4 }
  0x4c   : > { %v201_v2 = vmul.f32 %v330_v1, %v193_v0  ;;  %s708_s12 = scalar_lea.hbm %s273_s0, 384  ;;  %s446_s23 = scalar_lea.vmem %s706_s22, 128 }
  0x4d   : > { %p447_p8 = scmp.ne.s32.totalorder %s706_s22, %s446_s23  ;;  %p771_p12 = scmp.ne.s32.totalorder %s766_s25, 0 }
  0x4e   : > { %202 = vst [vmem:[%s189_s29] sm:$0xff] %v201_v2  ;;  %s548_s6 = smov [#allocation5]  }
  0x4f   : > { %p448_p0 = pnand %p447_p8, %p771_p12  ;;  %s450_s7 = sshll.u32 %s548_s6, 4  ;;  %s451_s7 = int_to_ptr.vmem [resolvable:$false] %s450_s7 }
  0x50   : > { %s452_s18 = scalar_lea.vmem %s451_s7, 256  ;;  %p453_p13 = scmp.lt.s32.totalorder %s706_s22, %s451_s7 }
  0x51   : > { %p449_p11 = pneg %p448_p0  ;;  %p454_p2 = scmp.lt.s32.totalorder %s452_s18, %s446_s23 }
  0x53   : > { %p455_p4 = por %p454_p2, %p453_p13 }
  0x55   : > { %p456_p6 = pnand %p455_p4, %p449_p11 }
  0x57   : > { %459 = shalt.err (!%p456_p6)
}
  0x58   : > { %s474_s27 = scalar_lea.hbm %s273_s0, 512  ;;  %s464_s8 = scalar_lea.hbm %s761_s2, 2048 }
  0x59   : > { %p461_p7 = scmp.ne.s32.totalorder %s708_s12, %s474_s27  ;;  %p465_p5 = scmp.lt.u32.totalorder %s708_s12, %s761_s2 }
  0x5a   : > { %p466_p3 = scmp.lt.u32.totalorder %s464_s8, %s474_s27  ;;  %p468_p8 = scmp.lt.u32.totalorder %s474_s27, %s708_s12 }
  0x5b   : > { %p462_p10 = pnand %p461_p7, %p771_p12 }
  0x5c   : > { %p467_p9 = por %p466_p3, %p465_p5 }
  0x5d   : > { %p463_p1 = pneg %p462_p10 }
  0x5e   : > { %p469_p0 = por %p468_p8, %p467_p9 }
  0x60   : > { %p470_p11 = pnand %p469_p0, %p463_p1 }
  0x62   : > { %473 = shalt.err (!%p470_p11)
}
  0x63   : > { %339 = dma.vmem_to_hbm [thread:$0]  (%p771_p12), %s706_s22, 128, %s708_s12, %s204_s13  }
  0x64 PF: > { %p350_p13 = scmp.ge.s32.totalorder %s545_s16, 2  ;;  %s233_s0 = sand.u32 1, %s517_s9  }
  0x65   : > { %p772_p2 = scmp.ne.s32.totalorder %s767_s28, 0  ;;  %s234_s26 = scalar_lea.sflag [#allocation4], %s233_s0 }
  0x67   : > { %p346_p4 = pnand %p350_p13, %p772_p2 }
  0x69   : > { %512 = dma.done.wait (!%p346_p4), %s234_s26, 128  }
  0x6a   : > { %514 = vsyncadd (!%p346_p4), %s234_s26, 4294967168  ;;  %s18_s16 = sadd.s32 1, %s545_s16   ;;  %s773_s9 = smov %s521_s10 }
  0x6b   : > { %p15_p6 = scmp.ge.s32.totalorder %s18_s16, 6   ;;  %s774_s10 = smov %s525_s11 }
  0x6c   : > { %s775_s11 = smov %s642_s30  ;;  %s776_s12 = smov %s537_s14 }
  0x6d   : > { %s777_s13 = smov %s541_s15  ;;  %s778_s14 = smov %s781_s19 }
  0x6e   : > { %s779_s15 = smov %s785_s20  ;;  %17 = sbr.rel (!%p15_p6) target bundleno = 9 (0x9), region = 76 }
  0x75   :  { %239 = vsyncpa [#allocation3], 1 }
  0x76   :  { %241 = vsyncpa [#allocation3 + $0x1], 1 }
  0x77   :  { %242 = vsyncpa [#allocation4], 1 }
  0x78   :  { %244 = vsyncpa [#allocation4 + $0x1], 1 }

// kernel: biattention.2
= control target key start
LH: loop header
LB: loop body
LE: loop exit
PB: predicated region body
PF: predicated region fallthrough
CT: control target
= control target key end

     0   :  { %s1720_s0 = inlined_call_operand.hbm [shape: f32[2,16,128], index: 0, kind: input, shape index: {}]   ;;  %s1721_s1 = inlined_call_operand.hbm [shape: bf16[2,8,128], index: 1, kind: input, shape index: {}]   ;;  %s1722_s2 = inlined_call_operand.hbm [shape: f32[2,1,8], index: 2, kind: input, shape index: {}]   ;;  %s1723_s3 = inlined_call_operand.hbm [shape: f32[1,128], index: 3, kind: input, shape index: {}]   ;;  %s1724_s4 = inlined_call_operand.hbm [shape: f32[1,128], index: 4, kind: input, shape index: {}]   ;;  %s1725_s5 = inlined_call_operand.hbm [shape: f32[2,16,512], index: 5, kind: output, shape index: {0}]   ;;  %s1726_s6 = inlined_call_operand.hbm [shape: f32[2,16,1], index: 6, kind: output, shape index: {1}]  }
   0x1   :  { %1752 = sst [smem:[#allocation28_spill]] %s1721_s1 }
   0x2   :  { %1753 = sst [smem:[#allocation29_spill]] %s1723_s3 }
   0x3   :  { %1754 = sst [smem:[#allocation30_spill]] %s1724_s4 }
   0x4   :  { %1755 = sst [smem:[#allocation31_spill]] %s1725_s5 }
   0x5   :  { %1756 = sst [smem:[#allocation32_spill]] %s1726_s6 }
   0x6   :  { %12 = vsyncpa [#allocation3], 0 }
   0x7   :  { %14 = vsyncpa [#allocation3 + $0x1], 0 }
   0x8   :  { %15 = vsyncpa [#allocation6], 0 }
   0x9   :  { %17 = vsyncpa [#allocation6 + $0x1], 0 }
   0xa   :  { %18 = vsyncpa [#allocation9], 0 }
   0xb   :  { %19 = vsyncpa [#allocation4], 0 }
   0xc   :  { %21 = vsyncpa [#allocation4 + $0x1], 0 }
   0xd   :  { %22 = vsyncpa [#allocation13], 0 }
   0xe   :  { %24 = vsyncpa [#allocation13 + $0x1], 0  ;;  %s1289_s21 = smov 0   ;;  %s1291_s22 = smov 0  }
   0xf   :  { %s1293_s23 = smov 0   ;;  %s1295_s24 = smov 0  }
  0x10   :  { %s1297_s25 = smov 0   ;;  %s1299_s26 = smov 0  }
  0x11   :  { %s1301_s27 = smov 0   ;;  %s1303_s28 = smov 0  }
  0x12   :  { %s1305_s29 = smov 0   ;;  %s1307_s30 = smov 0  }
  0x13   :  { %s1309_s7 = smov 0  }
  0x14 LB: > { %1757 = sst [smem:[#allocation19_spill]] %s1207_s22  ;;  %s1345_s8 = sadd.s32 4294967295, %s1243_s7   ;;  %s1243_s7 = sphi %s1309_s7, %s30_s7   ;;  %s1239_s30 = sphi %s1307_s30, %s1817_s30   ;;  %s1235_s29 = sphi %s1305_s29, %s1816_s29   ;;  %s1231_s28 = sphi %s1303_s28, %s1815_s28   ;;  %s1227_s27 = sphi %s1301_s27, %s1814_s27   ;;  %s1223_s26 = sphi %s1299_s26, %s1813_s26   ;;  %s1219_s25 = sphi %s1297_s25, %s1812_s25   ;;  %s1215_s24 = sphi %s1295_s24, %s1811_s24   ;;  %s1211_s23 = sphi %s1293_s23, %s1810_s23   ;;  %s1207_s22 = sphi %s1291_s22, %s1809_s22   ;;  %s1203_s21 = sphi %s1289_s21, %s1806_s21  }
  0x15   : > { %1758 = sst [smem:[#allocation20_spill]] %s1215_s24  ;;  %p745_p0 = scmp.ge.s32.totalorder %s1243_s7, 1 }
  0x16   : > { %1759 = sst [smem:[#allocation21_spill]] %s1227_s27  ;;  %p1727_p1 = scmp.eq.s32.totalorder %s1345_s8, 0 }
  0x17   : > { %1760 = sst [smem:[#allocation22_spill]] %s1231_s28  ;;  %p225_p3 = scmp.lt.s32.totalorder %s1243_s7, 5 }
  0x18   : > { %s1245_s10 = smov [#allocation8]   ;;  %s1763_s3 = sld [smem:[#allocation29_spill]] }
  0x19   : > { %p1351_p4 = pnand %p745_p0, %p225_p3  ;;  %s238_s11 = sshll.u32 %s1245_s10, 4  ;;  %s239_s11 = int_to_ptr.vmem [resolvable:$true] %s238_s11 }
  0x1b   : > { %s1761_s9 = scalar_select %p1351_p4, 1, 0 }
  0x1c   : > { %p809_p5 = pneg %p1351_p4 }
  0x1e   : > { %p1359_p6 = pnand %p809_p5, %p1727_p1  ;;  %s935_s15 = scalar_lea.hbm %s1763_s3, 16 }
  0x1f   : > { %p936_p7 = scmp.ne.s32.totalorder %s1763_s3, %s935_s15  ;;  %p942_p11 = scmp.lt.u32.totalorder %s935_s15, %s1763_s3 }
  0x20   : > { %p1734_p8 = pneg %p1359_p6 }
  0x22   : > { %p938_p9 = pnand %p1734_p8, %p936_p7 }
  0x24   : > { %p939_p10 = pneg %p938_p9 }
  0x26   : > { %p944_p12 = pnand %p942_p11, %p939_p10 }
  0x28   : > { %947 = shalt.err (!%p944_p12)
}
  0x29   : > { %s948_s20 = scalar_lea.vmem %s239_s11, 16  ;;  %s955_s10 = scalar_lea.vmem %s239_s11, 32 }
  0x2a   : > { %p949_p13 = scmp.ne.s32.totalorder %s239_s11, %s948_s20  ;;  %p956_p5 = scmp.lt.s32.totalorder %s239_s11, %s239_s11 }
  0x2b   : > { %p957_p2 = scmp.lt.s32.totalorder %s955_s10, %s948_s20 }
  0x2c   : > { %p951_p0 = pnand %p949_p13, %p1734_p8 }
  0x2d   : > { %p958_p1 = por %p957_p2, %p956_p5 }
  0x2e   : > { %p952_p3 = pneg %p951_p0 }
  0x30   : > { %p959_p4 = pnand %p958_p1, %p952_p3 }
  0x32   : > { %962 = shalt.err (!%p959_p4)
}
  0x33   : > { %812 = dma.hbm_to_vmem [thread:$0]  (!%p1359_p6), %s1763_s3, 16, %s239_s11, [#allocation9]  }
  0x34   : > { %p1733_p1 = scmp.eq.s32.totalorder %s1243_s7, 0  ;;  %p84_p2 = scmp.ne.s32.totalorder %s1211_s23, %s1207_s22 }
  0x35   : > { %p90_p4 = scmp.ne.s32.totalorder %s1207_s22, %s1203_s21  ;;  %p1732_p7 = scmp.lt.s32.totalorder %s1243_s7, 4 }
  0x36   : > { %s280_s16 = sand.u32 1, %s1243_s7   ;;  %p86_p9 = por %p84_p2, %p1733_p1 }
  0x37   : > { %p1764_p10 = scmp.eq.s32.totalorder %s1345_s8, 0  ;;  %s1729_s18 = sand.u32 1, %s1211_s23  }
  0x38   : > { %s752_s19 = sshll.u32 %s1729_s18, 2  ;;  %s753_s20 = sshll.u32 %s1239_s30, 6 }
  0x39   : > { %p1397_p11 = por %p90_p4, %p1764_p10  ;;  %s1767_s1 = sld [smem:[#allocation28_spill]] }
  0x3a   : > { %s284_s21 = scalar_lea.vmem [#allocation5], %s752_s19  ;;  %p1412_p12 = pnand %p1732_p7, %p86_p9 }
  0x3b   : > { %s1765_s17 = scalar_select %p1397_p11, 1, 0 }
  0x3c   : > { %s291_s14 = sshll.u32 %s284_s21, 4  ;;  %s1246_s18 = smov [#allocation10]   ;;  %s1416_s14 = int_to_ptr.vmem [resolvable:$true] %s291_s14 }
  0x3d   : > { %1766 = sst [smem:[#allocation23_spill]] %s1765_s17  ;;  %s1418_s3 = sshll.u32 %s1246_s18, 4  ;;  %s250_s3 = int_to_ptr.vmem [resolvable:$true] %s1418_s3 }
  0x3e   : > { %s1768_s15 = scalar_select %p1412_p12, 1, 0 }
  0x3f   : > { %s1408_s11 = scalar_lea.hbm %s1767_s1, %s753_s20  ;;  %s1420_s20 = scalar_lea.sflag [#allocation6], %s280_s16 }
  0x40   : > { %s963_s10 = scalar_lea.hbm %s1408_s11, 64  ;;  %p1736_p0 = pneg %p1412_p12 }
  0x41   : > { %p964_p13 = scmp.ne.s32.totalorder %s1408_s11, %s963_s10  ;;  %s968_s21 = scalar_lea.hbm %s1767_s1, 128 }
  0x42   : > { %p969_p2 = scmp.lt.u32.totalorder %s1408_s11, %s1767_s1  ;;  %p970_p4 = scmp.lt.u32.totalorder %s968_s21, %s963_s10 }
  0x43   : > { %p966_p3 = pnand %p1736_p0, %p964_p13  ;;  %p972_p10 = scmp.lt.u32.totalorder %s963_s10, %s1408_s11 }
  0x44   : > { %p971_p9 = por %p970_p4, %p969_p2 }
  0x45   : > { %p967_p5 = pneg %p966_p3 }
  0x46   : > { %p973_p7 = por %p972_p10, %p971_p9 }
  0x48   : > { %p974_p1 = pnand %p973_p7, %p967_p5 }
  0x4a   : > { %977 = shalt.err (!%p974_p1)
}
  0x4b   : > { %s978_s16 = scalar_lea.vmem %s1416_s14, 64  ;;  %s1247_s18 = smov [#allocation5]  }
  0x4c   : > { %p979_p13 = scmp.ne.s32.totalorder %s1416_s14, %s978_s16  ;;  %s983_s19 = sshll.u32 %s1247_s18, 4  ;;  %s984_s19 = int_to_ptr.vmem [resolvable:$false] %s983_s19 }
  0x4d   : > { %s985_s5 = scalar_lea.vmem %s984_s19, 128  ;;  %p986_p11 = scmp.lt.s32.totalorder %s1416_s14, %s984_s19 }
  0x4e   : > { %p981_p3 = pnand %p979_p13, %p1736_p0  ;;  %p987_p2 = scmp.lt.s32.totalorder %s985_s5, %s978_s16 }
  0x50   : > { %p982_p8 = pneg %p981_p3  ;;  %p988_p4 = por %p987_p2, %p986_p11 }
  0x52   : > { %p989_p9 = pnand %p988_p4, %p982_p8 }
  0x54   : > { %992 = shalt.err (!%p989_p9)
}
  0x55   : > { %822 = dma.hbm_to_vmem [thread:$0]  (!%p1412_p12), %s1408_s11, 64, %s1416_s14, %s1420_s20  }
  0x56   : > { %s1769_s4 = sld [smem:[#allocation30_spill]]  ;;  %p1770_p8 = pneg %p1359_p6 }
  0x5c   : > { %s993_s13 = scalar_lea.hbm %s1769_s4, 16 }
  0x5d   : > { %p994_p1 = scmp.ne.s32.totalorder %s1769_s4, %s993_s13  ;;  %p1000_p5 = scmp.lt.u32.totalorder %s993_s13, %s1769_s4 }
  0x5f   : > { %p996_p7 = pnand %p994_p1, %p1770_p8 }
  0x61   : > { %p997_p11 = pneg %p996_p7 }
  0x63   : > { %p1002_p10 = pnand %p1000_p5, %p997_p11 }
  0x65   : > { %1005 = shalt.err (!%p1002_p10)
}
  0x66   : > { %s1006_s11 = scalar_lea.vmem %s250_s3, 16  ;;  %p1771_p3 = pmov %p1770_p8 }
  0x67   : > { %p1007_p13 = scmp.ne.s32.totalorder %s250_s3, %s1006_s11  ;;  %s1013_s14 = scalar_lea.vmem %s250_s3, 32 }
  0x68   : > { %p1014_p9 = scmp.lt.s32.totalorder %s250_s3, %s250_s3  ;;  %p1015_p0 = scmp.lt.s32.totalorder %s1013_s14, %s1006_s11 }
  0x69   : > { %p1009_p2 = pnand %p1007_p13, %p1771_p3 }
  0x6a   : > { %p1016_p12 = por %p1015_p0, %p1014_p9 }
  0x6b   : > { %p1010_p4 = pneg %p1009_p2 }
  0x6d   : > { %p1017_p1 = pnand %p1016_p12, %p1010_p4 }
  0x6f   : > { %1020 = shalt.err (!%p1017_p1)
}
  0x70   : > { %815 = dma.hbm_to_vmem [thread:$0]  (!%p1359_p6), %s1769_s4, 16, %s250_s3, [#allocation9]  }
  0x71   : > { %s744_s10 = sadd.s32 4294967294, %s1243_s7   ;;  %s39_s13 = sadd.s32 1, %s1235_s29 }
  0x72   : > { %s42_s12 = sadd.s32 1, %s1239_s30  ;;  %p40_p12 = scmp.ge.s32.totalorder %s39_s13, 2 }
  0x73   : > { %s51_s21 = sadd.s32 1, %s1223_s26  ;;  %p58_p0 = scmp.ne.s32.totalorder %s1223_s26, %s1219_s25 }
  0x74   : > { %p64_p8 = scmp.ne.s32.totalorder %s1219_s25, %s1215_s24  ;;  %s1819_s13 = smov (%p40_p12, %s39_s13), 0 }
  0x75   : > { %1772 = sst [smem:[#allocation24_spill]] %s1819_s13  ;;  %s1821_s12 = smov (!%p40_p12, %s42_s12), %s1239_s30 }
  0x76   : > { %s47_s18 = ssub.s32 %s1235_s29, %s1819_s13  ;;  %p1773_p7 = scmp.eq.s32.totalorder %s1243_s7, 0 }
  0x77   : > { %p44_p11 = scmp.ge.s32.totalorder %s1821_s12, 2  ;;  %p1775_p5 = scmp.eq.s32.totalorder %s1345_s8, 0 }
  0x78   : > { %p1484_p6 = por %p1773_p7, %p58_p0  ;;  %p1777_p13 = scmp.eq.s32.totalorder %s1345_s8, 3 }
  0x79   : > { %p1490_p10 = por %p1775_p5, %p64_p8  ;;  %p190_p2 = scmp.eq.s32.totalorder %s744_s10, 3 }
  0x7a   : > { %p1496_p3 = por %p1777_p13, %p58_p0  ;;  %s1823_s12 = smov (%p44_p11, %s1821_s12), 0 }
  0x7b   : > { %s1776_s16 = scalar_select %p1490_p10, 1, 0 }
  0x7c   : > { %s1778_s19 = scalar_select %p1496_p3, 1, 0 }
  0x7d   : > { %1780 = sst [smem:[#allocation26_spill]] %s1823_s12  ;;  %p1502_p4 = por %p190_p2, %p64_p8 }
  0x7e   : > { %1779 = sst [smem:[#allocation25_spill]] %s1778_s19  ;;  %s260_s14 = sand.u32 1, %s1223_s26  }
  0x7f   : > { %s1781_s11 = scalar_select %p1502_p4, 1, 0 }
  0x80   : > { %s46_s5 = ssub.s32 %s1239_s30, %s1823_s12  ;;  %s749_s1 = sshll.u32 %s260_s14, 3 }
  0x81   : > { %1782 = sst [smem:[#allocation27_spill]] %s1781_s11  ;;  %s48_s6 = sor.u32 %s47_s18, %s46_s5 }
  0x82   : > { %p75_p9 = scmp.eq.s32.totalorder %s46_s5, 0  ;;  %p49_p1 = scmp.eq.s32.totalorder %s48_s6, 0 }
  0x83   : > { %s1783_s4 = sadd.s32 1, %s1211_s23  ;;  %s750_s24 = sshll.u32 %s1239_s30, 1 }
  0x84   : > { %s1512_s13 = scalar_select %p75_p9, %s1211_s23, %s1783_s4  }
  0x85   : > { %s1515_s10 = scalar_select %p49_p1, %s1223_s26, %s51_s21  }
  0x86   : > { %s269_s19 = sadd.s32 %s1235_s29, %s750_s24  ;;  %s264_s27 = scalar_lea.vmem [#allocation2], %s749_s1 }
  0x87   : > { %s273_s28 = sshll.u32 %s264_s27, 4  ;;  %s751_s17 = sshll.u32 %s269_s19, 7  ;;  %s1519_s28 = int_to_ptr.vmem [resolvable:$true] %s273_s28 }
  0x88   : > { %s1524_s12 = scalar_lea.hbm %s1720_s0, %s751_s17  ;;  %p1784_p12 = scmp.lt.s32.totalorder %s1243_s7, 4 }
  0x89   : > { %s754_s1 = sshll.u32 %s1239_s30, 4  ;;  %s261_s22 = scalar_lea.sflag [#allocation3], %s260_s14 }
  0x8a   : > { %p1530_p0 = pnand %p1784_p12, %p1484_p6  ;;  %s1538_s21 = scalar_lea.hbm %s1722_s2, %s754_s1 }
  0x8b   : > { %s1021_s17 = scalar_lea.hbm %s1524_s12, 128  ;;  %s1026_s19 = scalar_lea.hbm %s1720_s0, 512 }
  0x8c   : > { %p1022_p8 = scmp.ne.s32.totalorder %s1524_s12, %s1021_s17  ;;  %p1023_p7 = pneg %p1530_p0 }
  0x8d   : > { %p1027_p5 = scmp.lt.u32.totalorder %s1524_s12, %s1720_s0  ;;  %p1028_p13 = scmp.lt.u32.totalorder %s1026_s19, %s1021_s17 }
  0x8e   : > { %p1024_p11 = pnand %p1023_p7, %p1022_p8  ;;  %p1030_p9 = scmp.lt.u32.totalorder %s1021_s17, %s1524_s12 }
  0x8f   : > { %p1029_p2 = por %p1028_p13, %p1027_p5 }
  0x90   : > { %p1025_p6 = pneg %p1024_p11 }
  0x91   : > { %p1031_p1 = por %p1030_p9, %p1029_p2 }
  0x93   : > { %p1032_p12 = pnand %p1031_p1, %p1025_p6 }
  0x95   : > { %1035 = shalt.err (!%p1032_p12)
}
  0x96   : > { %s1036_s14 = scalar_lea.vmem %s1519_s28, 128  ;;  %s1248_s6 = smov [#allocation2]  }
  0x97   : > { %p1037_p8 = scmp.ne.s32.totalorder %s1519_s28, %s1036_s14  ;;  %s1041_s1 = sshll.u32 %s1248_s6, 4  ;;  %s1042_s1 = int_to_ptr.vmem [resolvable:$false] %s1041_s1 }
  0x98   : > { %s1043_s24 = scalar_lea.vmem %s1042_s1, 256  ;;  %p1044_p3 = scmp.lt.s32.totalorder %s1519_s28, %s1042_s1 }
  0x99   : > { %p1039_p11 = pnand %p1037_p8, %p1023_p7  ;;  %p1045_p5 = scmp.lt.s32.totalorder %s1043_s24, %s1036_s14 }
  0x9b   : > { %p1040_p4 = pneg %p1039_p11  ;;  %p1046_p13 = por %p1045_p5, %p1044_p3 }
  0x9d   : > { %p1047_p2 = pnand %p1046_p13, %p1040_p4 }
  0x9f   : > { %1050 = shalt.err (!%p1047_p2)
}
  0xa0   : > { %819 = dma.hbm_to_vmem [thread:$0]  (!%p1530_p0), %s1524_s12, 128, %s1519_s28, %s261_s22  }
  0xa1   : > { %s1786_s27 = sand.u32 1, %s1211_s23   ;;  %s1051_s3 = scalar_lea.hbm %s1538_s21, 16 }
  0xa2   : > { %s301_s17 = scalar_lea.vmem [#allocation7], %s1786_s27  ;;  %p1052_p7 = scmp.ne.s32.totalorder %s1538_s21, %s1051_s3 }
  0xa3   : > { %s308_s18 = sshll.u32 %s301_s17, 4  ;;  %p1787_p3 = scmp.ne.s32.totalorder %s1768_s15, 0  ;;  %s309_s18 = int_to_ptr.vmem [resolvable:$true] %s308_s18 }
  0xa4   : > { %s1056_s11 = scalar_lea.hbm %s1722_s2, 32  ;;  %p1057_p1 = scmp.lt.u32.totalorder %s1538_s21, %s1722_s2 }
  0xa5   : > { %p1788_p4 = pneg %p1787_p3  ;;  %p1058_p12 = scmp.lt.u32.totalorder %s1056_s11, %s1051_s3 }
  0xa6   : > { %p1060_p8 = scmp.lt.u32.totalorder %s1051_s3, %s1538_s21 }
  0xa7   : > { %p1054_p6 = pnand %p1052_p7, %p1788_p4  ;;  %p1059_p0 = por %p1058_p12, %p1057_p1 }
  0xa9   : > { %p1055_p9 = pneg %p1054_p6  ;;  %p1061_p11 = por %p1060_p8, %p1059_p0 }
  0xab   : > { %p1062_p5 = pnand %p1061_p11, %p1055_p9 }
  0xad   : > { %1065 = shalt.err (!%p1062_p5)
}
  0xae   : > { %s1066_s28 = scalar_lea.vmem %s309_s18, 16  ;;  %p1789_p2 = pmov %p1788_p4 }
  0xaf   : > { %p1067_p13 = scmp.ne.s32.totalorder %s309_s18, %s1066_s28  ;;  %s1249_s12 = smov [#allocation7]  }
  0xb0   : > { %s1071_s22 = sshll.u32 %s1249_s12, 4  ;;  %s1072_s22 = int_to_ptr.vmem [resolvable:$false] %s1071_s22 }
  0xb1   : > { %p1069_p7 = pnand %p1067_p13, %p1789_p2  ;;  %s1073_s6 = scalar_lea.vmem %s1072_s22, 32 }
  0xb2   : > { %p1074_p6 = scmp.lt.s32.totalorder %s309_s18, %s1072_s22  ;;  %p1075_p10 = scmp.lt.s32.totalorder %s1073_s6, %s1066_s28 }
  0xb3   : > { %p1070_p4 = pneg %p1069_p7 }
  0xb4   : > { %p1076_p1 = por %p1075_p10, %p1074_p6 }
  0xb6   : > { %p1077_p12 = pnand %p1076_p1, %p1070_p4 }
  0xb8   : > { %1080 = shalt.err (!%p1077_p12)
}
  0xb9   : > { %825 = dma.hbm_to_vmem [thread:$0]  (!%p1787_p3), %s1538_s21, 16, %s309_s18, %s1420_s20  }
  0xba   : > { %p1790_p9 = scmp.ne.s32.totalorder %s1761_s9, 0 }
  0xbb   : > { %s1590_s1 = sand.u32 (!%p1790_p9), 1, %s1219_s25   ;;  %p1791_p10 = scmp.ne.s32.totalorder (!%p1790_p9), %s1776_s16, 0 }
  0xbc   : > { %317 = sbr.rel (%p1790_p9) target bundleno = 825 (0x339), region = 40  ;;  %s756_s24 = sshll.u32 (!%p1790_p9), %s1590_s1, 3 }
  0xbd   : > { %s320_s27 = scalar_lea.sflag (!%p1790_p9), [#allocation3], %s1590_s1  ;;  %s323_s17 = scalar_lea.vmem (!%p1790_p9), [#allocation2], %s756_s24 }
  0xc3   : > { %1182 = dma.done.wait (%p1791_p10), %s320_s27, 128  }
  0xc4   : > { %1184 = vsyncadd (%p1791_p10), %s320_s27, 4294967168  ;;  %s1792_s15 = sld [smem:[#allocation19_spill]]  ;;  %s1793_s9 = sld [smem:[#allocation23_spill]] }
  0xc5   : > { %s328_s20 = sand.u32 1, %s1345_s8  }
  0xc6   : > { %s329_s3 = scalar_lea.sflag [#allocation6], %s328_s20 }
  0xca   : > { %s330_s21 = sand.u32 1, %s1792_s15   ;;  %p1794_p3 = scmp.ne.s32.totalorder %s1793_s9, 0 }
  0xcb   : > { %s757_s18 = sshll.u32 %s330_s21, 2 }
  0xcc   : > { %s332_s4 = scalar_lea.vmem [#allocation5], %s757_s18 }
  0xcd   : > { %1186 = dma.done.wait (%p1794_p3), %s329_s3, 80  }
  0xce   : > { %1188 = vsyncadd (%p1794_p3), %s329_s3, 4294967216  ;;  %s340_s19 = scalar_lea.vmem [#allocation7], %s330_s21  ;;  %p1795_p0 = scmp.eq.s32.totalorder %s1345_s8, 0 }
  0xd0   : > { %1190 = dma.done.wait (%p1795_p0), [#allocation9], 32   ;;  %p1796_p8 = pmov %p1795_p0 }
  0xd1   : > { %v1250_v0 = vmov 0.0   ;;  %vm1251_vm0 = vmmov 0   ;;  %v393_v1 = vld [vmem:[%s332_s4] sm:$0xf]  ;;  %v1610_v2 = vld [vmem:[%s323_s17] sm:$0xff]  ;;  %vm461_vm1 = vcmask 64512  }
  0xd2   : > { %1192 = vsyncadd (%p1796_p8), [#allocation9], 4294967264  ;;  %779 = vmatprep.subr.bf16.mxu0 %v1250_v0  ;;  %781 = vmatprep.mubr.msk.bf16.mxu0 %vm1251_vm0, %v1250_v0  ;;  %v763_v3 = vld [vmem:[#allocation10] ss:$0 sm:$0xff]  ;;  %v762_v5 = vld [vmem:[#allocation8] ss:$0 sm:$0xff] }
  0xd3   : > { %785 = vmatprep.subr.bf16.mxu1 %v1250_v0  ;;  %787 = vmatprep.mubr.msk.bf16.mxu1 %vm1251_vm0, %v1250_v0  ;;  %v412_v4 = vmul.f32 %v763_v3, %v1610_v2  ;;  %v403_v6 = vmul.f32 %v762_v5, %v1610_v2  ;;  %v764_v10 = vld [vmem:[%s340_s19] ss:$0 sm:$0xff]  ;;  %vm476_vm2 = vcmask 1043456   ;;  %s1797_s8 = sld [smem:[#allocation22_spill]]  ;;  %vm525_vm3 = vcmask 7168   ;;  %s1798_s16 = sld [smem:[#allocation21_spill]] }
  0xd4   : > { %780 = vmatpush3.bf16.xpose.msra.mxu0 %v393_v1  ;;  %v478_v17 = vsel %vm476_vm2, %v393_v1, 0  ;;  %s390_s11 = scalar_lea.vmem [#allocation12], %s756_s24  ;;  %s1799_s5 = sld [smem:[#allocation25_spill]] }
  0xd5   : > { %v413_v7 = vpack.c.bf16 %v412_v4, %v412_v4  ;;  %404 = vadd.xlane.f32.xlu0 %v403_v6  ;;  %786 = vmatpush3.bf16.msra.mxu1 %v478_v17  ;;  %s760_s14 = sshll.u32 %s1590_s1, 5  ;;  %s564_s6 = sshll.u32 %s390_s11, 4  ;;  %s1626_s6 = int_to_ptr.vmem [resolvable:$true] %s564_s6 }
  0xd6   : > { %s1620_s28 = scalar_lea.vmem [#allocation11], %s760_s14  ;;  %s1800_s15 = sld [smem:[#allocation32_spill]] }
  0xd7   : > { %521 = vst [vmem:[%s1620_s28] sm:$0xff] %v1610_v2  ;;  %s533_s20 = scalar_lea.sflag [#allocation13], %s1590_s1  ;;  %s1081_s21 = scalar_lea.vmem %s1626_s6, 128 }
  0xd8   : > { %p1082_p11 = scmp.ne.s32.totalorder %s1626_s6, %s1081_s21  ;;  %s1252_s18 = smov [#allocation12]  }
  0xd9   : > { %s771_s12 = sshll.u32 %s1797_s8, 1  ;;  %s1085_s3 = sshll.u32 %s1252_s18, 4  ;;  %s1086_s3 = int_to_ptr.vmem [resolvable:$false] %s1085_s3 }
  0xda   : > { %s560_s22 = sadd.s32 %s1798_s16, %s771_s12  ;;  %p1801_p5 = scmp.ne.s32.totalorder %s1799_s5, 0 }
  0xdb   : > { %782 = vmatmul.mubr.bf16.vlgmr.msra.gmra.mrb[0].mxu0 %v413_v7  ;;  %s772_s24 = sshll.u32 %s560_s22, 7  ;;  %s1087_s4 = scalar_lea.vmem %s1086_s3, 256 }
  0xdc   : > { %s562_s9 = scalar_lea.hbm %s1800_s15, %s772_s24  ;;  %p1083_p13 = pnand %p1082_p11, %p1801_p5 }
  0xdd   : > { %p1088_p7 = scmp.lt.s32.totalorder %s1626_s6, %s1086_s3  ;;  %p1089_p4 = scmp.lt.s32.totalorder %s1087_s4, %s1081_s21 }
  0xde   : > { %p1084_p2 = pneg %p1083_p13 }
  0xdf   : > { %p1090_p6 = por %p1089_p4, %p1088_p7 }
  0xe1   : > { %p1091_p1 = pnand %p1090_p6, %p1084_p2 }
 0x162   : > { %v405_v8 = vpop.xlane.xlu0 %404 }
 0x1ae   : > { %v448_v9 = vpop.f32.mrb[0].mxu0 }
 0x1af   : > { %v449_v11 = vadd.f32 %v448_v9, %v405_v8  ;;  %v783_v12 = vpop.f32.mrb[1].mxu0 }
 0x1b0   : > { %v451_v13 = vpop.f32.mrb[2].mxu0 }
 0x1b1   : > { %v784_v14 = vpop.f32.mrb[3].mxu0  ;;  %v460_v15 = vadd.f32 %v764_v10, %v449_v11 }
 0x1b3   : > { %v462_v16 = vsel %vm461_vm1, %v460_v15, -inf }
 0x1b4   : > { %463 = vmax.xlane.f32.xlu0 %v462_v16 }
 0x241   : > { %v464_v18 = vpop.xlane.xlu0 %463 }
 0x242   : > { %v465_v19 = vsub.f32 %v460_v15, %v464_v18  ;;  %526 = vst.msk [vmem:[%s390_s11] sm:$0xff] %vm525_vm3, %v464_v18 }
 0x244   : > { %v466_v20 = vmul.f32 1.442695, %v465_v19 }
 0x246   : > { %931 = vpow2.f32 %v466_v20 }
 0x250   : > { %v932_v21 = vpop.eup %931 }
 0x251   : > { %v468_v22 = vsel %vm461_vm1, %v932_v21, 0.0  ;;  %v472_v23 = vpack.c.bf16 %v932_v21, %v932_v21 }
 0x252   : > { %469 = vadd.xlane.f32.xlu1 %v468_v22 }
 0x253   : > { %788 = vmatmul.mubr.msk.bf16.vlgmr.msra.gmra.mrb[0].mxu1 %vm461_vm1, %v472_v23 }
 0x254   : > { %1094 = shalt.err (!%p1091_p1)
}
 0x255   : > { %s1095_s19 = scalar_lea.hbm %s562_s9, 128  ;;  %s1099_s12 = scalar_lea.hbm %s1800_s15, 512 }
 0x256   : > { %p1096_p12 = scmp.ne.s32.totalorder %s562_s9, %s1095_s19  ;;  %p1100_p3 = scmp.lt.u32.totalorder %s562_s9, %s1800_s15 }
 0x257   : > { %p1101_p0 = scmp.lt.u32.totalorder %s1099_s12, %s1095_s19  ;;  %p1103_p11 = scmp.lt.u32.totalorder %s1095_s19, %s562_s9 }
 0x258   : > { %p1097_p9 = pnand %p1096_p12, %p1801_p5 }
 0x259   : > { %p1102_p8 = por %p1101_p0, %p1100_p3 }
 0x25a   : > { %p1098_p10 = pneg %p1097_p9 }
 0x25b   : > { %p1104_p13 = por %p1103_p11, %p1102_p8 }
 0x25d   : > { %p1105_p2 = pnand %p1104_p13, %p1098_p10 }
 0x25f   : > { %1108 = shalt.err (!%p1105_p2)
}
 0x260   : > { %806 = dma.vmem_to_hbm [thread:$0]  (%p1801_p5), %s1626_s6, 128, %s562_s9, %s533_s20  }
 0x261   : > { %s768_s27 = sshll.u32 %s1798_s16, 2  ;;  %s769_s17 = sshll.u32 %s1797_s8, 3 }
 0x262   : > { %s545_s21 = sadd.s32 %s769_s17, %s768_s27  ;;  %s549_s3 = sshll.u32 %s1620_s28, 4  ;;  %s1658_s3 = int_to_ptr.vmem [resolvable:$true] %s549_s3 }
 0x263   : > { %s770_s18 = sshll.u32 %s545_s21, 7  ;;  %s1802_s20 = sld [smem:[#allocation31_spill]] }
 0x264   : > { %s528_s8 = scalar_lea.sflag [#allocation4], %s1590_s1  ;;  %s1109_s16 = scalar_lea.vmem %s1658_s3, 512 }
 0x265   : > { %p1110_p7 = scmp.ne.s32.totalorder %s1658_s3, %s1109_s16  ;;  %s1253_s19 = smov [#allocation11]  }
 0x266   : > { %s1113_s11 = sshll.u32 %s1253_s19, 4  ;;  %s1114_s11 = int_to_ptr.vmem [resolvable:$false] %s1113_s11 }
 0x267   : > { %p1111_p4 = pnand %p1110_p7, %p1801_p5  ;;  %s1115_s14 = scalar_lea.vmem %s1114_s11, 1024 }
 0x268   : > { %p1116_p1 = scmp.lt.s32.totalorder %s1658_s3, %s1114_s11  ;;  %p1117_p12 = scmp.lt.s32.totalorder %s1115_s14, %s1109_s16 }
 0x269   : > { %s1656_s4 = scalar_lea.hbm %s1802_s20, %s770_s18  ;;  %p1112_p6 = pneg %p1111_p4 }
 0x26a   : > { %p1118_p9 = por %p1117_p12, %p1116_p1 }
 0x26c   : > { %p1119_p10 = pnand %p1118_p9, %p1112_p6 }
 0x2df   : > { %v470_v24 = vpop.xlane.xlu1 %469 }
 0x2e0   : > { %933 = vrcp.f32 %v470_v24 }
 0x2ea   : > { %v934_v25 = vpop.eup %933 }
 0x326   : > { %v514_v26 = vpop.f32.mrb[0].mxu1 }
 0x327   : > { %v520_v27 = vmul.f32 %v934_v25, %v514_v26  ;;  %v789_v28 = vpop.f32.mrb[1].mxu1 }
 0x328   : > { %v517_v29 = vpop.f32.mrb[2].mxu1 }
 0x329   : > { %522 = vst [vmem:[%s1620_s28 + $0x8] sm:$0xff] %v520_v27  ;;  %v523_v30 = vmul.f32 %v520_v27, %v1610_v2  ;;  %v790_v31 = vpop.f32.mrb[3].mxu1 }
 0x32b   : > { %524 = vst [vmem:[%s1620_s28 + $0x10] sm:$0xff] %v523_v30 }
 0x32c   : > { %1122 = shalt.err (!%p1119_p10)
}
 0x32d   : > { %s1123_s1 = scalar_lea.hbm %s1656_s4, 512  ;;  %s1127_s22 = scalar_lea.hbm %s1802_s20, 2048 }
 0x32e   : > { %p1124_p3 = scmp.ne.s32.totalorder %s1656_s4, %s1123_s1  ;;  %p1128_p11 = scmp.lt.u32.totalorder %s1656_s4, %s1802_s20 }
 0x32f   : > { %p1129_p13 = scmp.lt.u32.totalorder %s1127_s22, %s1123_s1  ;;  %p1131_p7 = scmp.lt.u32.totalorder %s1123_s1, %s1656_s4 }
 0x330   : > { %p1125_p0 = pnand %p1124_p3, %p1801_p5 }
 0x331   : > { %p1130_p2 = por %p1129_p13, %p1128_p11 }
 0x332   : > { %p1126_p8 = pneg %p1125_p0 }
 0x333   : > { %p1132_p4 = por %p1131_p7, %p1130_p2 }
 0x335   : > { %p1133_p6 = pnand %p1132_p4, %p1126_p8 }
 0x337   : > { %1136 = shalt.err (!%p1133_p6)
}
 0x338   : > { %805 = dma.vmem_to_hbm [thread:$0]  (%p1801_p5), %s1658_s3, 512, %s1656_s4, %s528_s8  }
 0x339 PF: > { %s1803_s17 = sld [smem:[#allocation20_spill]]  ;;  %s1804_s21 = sld [smem:[#allocation27_spill]] }
 0x33a   : > { %p838_p1 = scmp.ge.s32.totalorder %s1243_s7, 2 }
 0x33f   : > { %s576_s18 = sand.u32 1, %s1803_s17   ;;  %p1805_p12 = scmp.ne.s32.totalorder %s1804_s21, 0 }
 0x340   : > { %s577_s6 = scalar_lea.sflag [#allocation4], %s576_s18 }
 0x341   : > { %p827_p9 = pnand %p838_p1, %p1805_p12 }
 0x343   : > { %1194 = dma.done.wait (!%p827_p9), %s577_s6, 512  }
 0x344   : > { %1196 = vsyncadd (!%p827_p9), %s577_s6, 4294966784  ;;  %s586_s9 = scalar_lea.sflag [#allocation13], %s576_s18 }
 0x345   : > { %1198 = dma.done.wait (!%p827_p9), %s586_s9, 128  }
 0x346   : > { %1200 = vsyncadd (!%p827_p9), %s586_s9, 4294967168  ;;  %s30_s7 = sadd.s32 1, %s1243_s7   ;;  %s1806_s21 = sld [smem:[#allocation19_spill]] }
 0x347   : > { %p27_p10 = scmp.ge.s32.totalorder %s30_s7, 6   ;;  %s1807_s5 = sld [smem:[#allocation24_spill]] }
 0x348   : > { %s1808_s3 = sld [smem:[#allocation26_spill]]  ;;  %s1809_s22 = smov %s1211_s23 }
 0x349   : > { %s1810_s23 = smov %s1512_s13  ;;  %s1811_s24 = smov %s1219_s25 }
 0x34a   : > { %s1812_s25 = smov %s1223_s26  ;;  %s1813_s26 = smov %s1515_s10 }
 0x34b   : > { %s1814_s27 = smov %s1235_s29  ;;  %s1815_s28 = smov %s1239_s30 }
 0x34c   :  { %29 = sbr.rel (!%p27_p10) target bundleno = 20 (0x14), region = 134 }
 0x34d   : > { %s1816_s29 = smov %s1807_s5 }
 0x34e   : > { %s1817_s30 = smov %s1808_s3 }
 0x353   :  { %591 = vsyncpa [#allocation3], 1 }
 0x354   :  { %593 = vsyncpa [#allocation3 + $0x1], 1 }
 0x355   :  { %594 = vsyncpa [#allocation6], 1 }
 0x356   :  { %596 = vsyncpa [#allocation6 + $0x1], 1 }
 0x357   :  { %597 = vsyncpa [#allocation9], 1 }
 0x358   :  { %598 = vsyncpa [#allocation4], 1 }
 0x359   :  { %600 = vsyncpa [#allocation4 + $0x1], 1 }
 0x35a   :  { %601 = vsyncpa [#allocation13], 1 }
 0x35b   :  { %603 = vsyncpa [#allocation13 + $0x1], 1 }

</bundles_post_ra>
